<compile_context>
chip_gen: v7x
topology: tpu7x:2x2x1
jax: 0.10.0
libtpu: 0.0.40
codegen_flags: <defaults>
</compile_context>

<pallas_src>
import functools
import math

import jax
import jax.numpy as jnp
from jax.experimental import pallas as pl
from jax.experimental.pallas import tpu as pltpu

_MIB = 1024 * 1024


def _round_up(x: int, n: int) -> int:
    return ((x + n - 1) // n) * n


def _cdiv(a: int, b: int) -> int:
    return (a + b - 1) // b


@functools.lru_cache(maxsize=1)
def _vmem_info():
    """Returns (physical VMEM capacity, scoped budget) in bytes."""
    try:
        cap = int(getattr(pltpu.get_tpu_info(), "vmem_capacity_bytes", 0))
    except Exception:
        cap = 0
    if cap <= 0:
        cap = 64 * _MIB  # conservative fallback: fits every generation
    # Leave headroom for Mosaic internal scratch / compiler temporaries:
    #   128 MiB (v5e/v6e) -> 112 MiB, 64 MiB per TC (v7x) -> 56 MiB.
    budget = min(cap - 8 * _MIB, (cap * 7) // 8)
    return cap, budget


# ----------------------------- kernel bodies -------------------------------


def _ffn_kernel_resident(x_ref, w1_ref, b1_ref, w2_ref, b2_ref, o_ref):
    # Single hidden chunk: both weight matrices are VMEM-resident; no scratch.
    h = jnp.dot(x_ref[...], w1_ref[...], preferred_element_type=jnp.float32)
    h = jnp.maximum(h + b1_ref[...], 0.0)                      # nn.ReLU()
    out = jnp.dot(h.astype(w2_ref.dtype), w2_ref[...],
                  preferred_element_type=jnp.float32)
    o_ref[...] = (out + b2_ref[...]).astype(o_ref.dtype)


def _ffn_chunk_body(x_ref, w1_ref, b1_ref, w2_ref, b2_ref, o_ref, acc_ref):
    # Hidden-chunk streaming with an f32 accumulator (acc_ref may alias o_ref).
    k = pl.program_id(1)

    @pl.when(k == 0)
    def _init():
        acc_ref[...] = jnp.zeros_like(acc_ref)

    h = jnp.dot(x_ref[...], w1_ref[...], preferred_element_type=jnp.float32)
    h = jnp.maximum(h + b1_ref[...], 0.0)                      # nn.ReLU()
    acc_ref[...] += jnp.dot(h.astype(w2_ref.dtype), w2_ref[...],
                            preferred_element_type=jnp.float32)

    @pl.when(k == pl.num_programs(1) - 1)
    def _finalize():
        o_ref[...] = (acc_ref[...] + b2_ref[...]).astype(o_ref.dtype)


def _ffn_kernel_stream_acc(x_ref, w1_ref, b1_ref, w2_ref, b2_ref, o_ref, acc_ref):
    _ffn_chunk_body(x_ref, w1_ref, b1_ref, w2_ref, b2_ref, o_ref, acc_ref)


def _ffn_kernel_stream_f32out(x_ref, w1_ref, b1_ref, w2_ref, b2_ref, o_ref):
    # f32 output block is resident across k (constant block index) -> use it
    # directly as the accumulator and skip the separate scratch buffer.
    _ffn_chunk_body(x_ref, w1_ref, b1_ref, w2_ref, b2_ref, o_ref, o_ref)


# ----------------------------- tile selection -------------------------------


def _select_tiles(m_p, dim_p, hid_p, isz, osz, budget, sub, prefer_tm,
                  separate_acc):
    """Returns (tm, tk).  tk == hid_p means weights-resident mode."""
    bias_bytes = 4 * (hid_p + dim_p) * 4

    def fits(tm, tk, acc):
        w = 4 * dim_p * tk * isz                     # W1^T + W2^T, double-buffered
        xo = 2 * tm * dim_p * (isz + osz)            # x / out tiles, double-buffered
        accb = tm * dim_p * 4 if acc else 0          # separate f32 accumulator
        tmp = tm * tk * 4 + tm * dim_p * 4           # h + matmul-result f32 temps
        return (w + xo + accb + tmp + bias_bytes) <= budget

    cands = {c for c in (1024, 768, 512, 384, 256, 192, 128, 96, 64, 48, 32, 16, 8)
             if c % sub == 0 and c <= m_p}
    if m_p <= 1024:
        cands.add(m_p)
    tm_cands = sorted(cands, reverse=True) or [m_p]

    # Phase 1: weights-resident (hidden axis collapses; weights DMAed once).
    for tm in tm_cands:
        if fits(tm, hid_p, False):
            return tm, hid_p

    # Phase 2: stream hidden chunks.  tm capped per generation; tk as large as
    # the budget allows (cuts accumulator round-trips and grid-step overhead).
    tk_cands = sorted({t for t in (2048, 1536, 1024, 768, 512, 384, 256, 128,
                                   hid_p // 2, hid_p // 4, hid_p // 8)
                       if t >= 128 and t % 128 == 0 and hid_p % t == 0},
                      reverse=True)
    tm_stream = [c for c in tm_cands if c <= prefer_tm] or [tm_cands[-1]]
    for tm in tm_stream:
        for tk in tk_cands:
            if fits(tm, tk, separate_acc):
                return tm, tk
    return tm_stream[-1], tk_cands[-1]          # last-resort fallback


# ----------------------------- public wrapper -------------------------------


def prepare_ffn_params(w1, b1, w2, b2, *, compute_dtype=jnp.bfloat16, lane=128):
    """One-time parameter prep: transpose to (in, out) layout, zero-pad dim /
    hidden to lane (128) multiples, cast to the matmul dtype.  bfloat16 is the
    default fast path (f32 accumulation in-kernel); float32 is a debug path.
    Zero padding is semantics preserving: padded hidden units give relu(0)=0
    and padded output columns are sliced off by the wrapper."""
    hidden, dim = w1.shape
    dim_p = _round_up(dim, lane)
    hid_p = _round_up(hidden, lane)
    w1t = jnp.zeros((dim_p, hid_p), compute_dtype).at[:dim, :hidden].set(
        w1.T.astype(compute_dtype))
    w2t = jnp.zeros((hid_p, dim_p), compute_dtype).at[:hidden, :dim].set(
        w2.T.astype(compute_dtype))
    b1p = jnp.zeros((1, hid_p), jnp.float32).at[0, :hidden].set(
        b1.astype(jnp.float32))
    b2p = jnp.zeros((1, dim_p), jnp.float32).at[0, :dim].set(
        b2.astype(jnp.float32))
    return w1t, b1p, w2t, b2p


@functools.partial(jax.jit, static_argnames=("vmem_budget_bytes",))
def feed_forward(x, w1t, b1p, w2t, b2p, *, vmem_budget_bytes=None):
    """x: (..., dim); (w1t, b1p, w2t, b2p) from prepare_ffn_params.
    Output has the same shape/dtype as x.  `vmem_budget_bytes` overrides the
    tile-selection budget (testing/tuning only)."""
    *lead, dim = x.shape
    m = math.prod(lead) if lead else 1
    dim_p, hid_p = w1t.shape
    compute_dtype = w1t.dtype
    out_dtype = x.dtype
    isz = jnp.dtype(compute_dtype).itemsize
    osz = jnp.dtype(out_dtype).itemsize
    f32_out = jnp.dtype(out_dtype) == jnp.dtype(jnp.float32)

    # ---- generation-aware VMEM budget & static tile selection ----
    cap, hw_budget = _vmem_info()
    budget = int(vmem_budget_bytes) if vmem_budget_bytes is not None else hw_budget
    prefer_tm = 1024 if cap >= 96 * _MIB else 512       # v5e/v6e vs v7x

    sub = 16 if isz < 4 else 8                           # sublane packing
    m_p = _round_up(m, sub)
    tm, tk = _select_tiles(m_p, dim_p, hid_p, isz, osz, budget, sub, prefer_tm,
                           separate_acc=not f32_out)
    resident = (tk == hid_p)
    num_m = _cdiv(m_p, tm)
    num_k = hid_p // tk

    # ---- activations: pad / cast only when needed (no copy if aligned) ----
    x2d = x.reshape(m, dim)
    needs_pad = (m_p != m) or (dim_p != dim)
    if needs_pad:
        xin = jnp.zeros((m_p, dim_p), compute_dtype).at[:m, :dim].set(
            x2d.astype(compute_dtype))
    else:
        xin = x2d.astype(compute_dtype)

    # ---- advisory cost estimate (weights counted at actual streamed traffic)
    weight_passes = 1 if resident else num_m
    cost = pl.CostEstimate(
        flops=4 * m_p * dim_p * hid_p,                   # two matmuls, 2 flops/MAC
        transcendentals=0,
        bytes_accessed=(m_p * dim_p * isz                # x
                        + weight_passes * 2 * dim_p * hid_p * isz
                        + 4 * (hid_p + dim_p)            # biases
                        + m_p * dim_p * osz),            # out
    )

    if resident:
        grid = (num_m,)
        in_specs = [
            pl.BlockSpec((tm, dim_p), lambda i: (i, 0)),      # x tile
            pl.BlockSpec((dim_p, hid_p), lambda i: (0, 0)),   # W1^T (resident)
            pl.BlockSpec((1, hid_p), lambda i: (0, 0)),       # b1  (resident)
            pl.BlockSpec((hid_p, dim_p), lambda i: (0, 0)),   # W2^T (resident)
            pl.BlockSpec((1, dim_p), lambda i: (0, 0)),       # b2  (resident)
        ]
        out_spec = pl.BlockSpec((tm, dim_p), lambda i: (i, 0))
        kernel = _ffn_kernel_resident
        scratch = []
        dims = ("parallel",)
    else:
        grid = (num_m, num_k)
        in_specs = [
            pl.BlockSpec((tm, dim_p), lambda i, k: (i, 0)),   # x tile (resident over k)
            pl.BlockSpec((dim_p, tk), lambda i, k: (0, k)),   # W1^T hidden chunk
            pl.BlockSpec((1, tk), lambda i, k: (0, k)),       # b1 chunk
            pl.BlockSpec((tk, dim_p), lambda i, k: (k, 0)),   # W2^T hidden chunk
            pl.BlockSpec((1, dim_p), lambda i, k: (0, 0)),    # b2
        ]
        out_spec = pl.BlockSpec((tm, dim_p), lambda i, k: (i, 0))
        dims = ("parallel", "arbitrary")
        if f32_out:
            kernel = _ffn_kernel_stream_f32out            # accumulate into o_ref
            scratch = []
        else:
            kernel = _ffn_kernel_stream_acc
            scratch = [pltpu.VMEM((tm, dim_p), jnp.float32)]

    out2d = pl.pallas_call(
        kernel,
        out_shape=jax.ShapeDtypeStruct((m_p, dim_p), out_dtype),
        grid_spec=pltpu.PrefetchScalarGridSpec(
            num_scalar_prefetch=0,
            grid=grid,
            in_specs=in_specs,
            out_specs=out_spec,
            scratch_shapes=scratch,
        ),
        compiler_params=pltpu.CompilerParams(
            dimension_semantics=dims,
            vmem_limit_bytes=int(hw_budget),
        ),
        cost_estimate=cost,
    )(xin, w1t, b1p, w2t, b2p)

    if needs_pad:
        out2d = out2d[:m, :dim]
    return out2d.reshape(*lead, dim)


def init_params(key, dim, hidden_dim, dtype=jnp.float32):
    """Deterministic torch.nn.Linear-style init: U(-1/sqrt(fan_in), 1/sqrt(fan_in))."""
    k1, k2, k3, k4 = jax.random.split(key, 4)
    bound1 = 1.0 / (dim ** 0.5)
    bound2 = 1.0 / (hidden_dim ** 0.5)
    w1 = jax.random.uniform(k1, (hidden_dim, dim), dtype, -bound1, bound1)
    b1 = jax.random.uniform(k2, (hidden_dim,), dtype, -bound1, bound1)
    w2 = jax.random.uniform(k3, (dim, hidden_dim), dtype, -bound2, bound2)
    b2 = jax.random.uniform(k4, (dim,), dtype, -bound2, bound2)
    return w1, b1, w2, b2


if __name__ == "__main__":
    key = jax.random.PRNGKey(0)
    kx, kp, kx2, kp2 = jax.random.split(key, 4)

    # ---- small shapes (weights-resident path) ----
    dim, hidden_dim = 32, 64
    batch, seq = 2, 8
    x = jax.random.normal(kx, (batch, seq, dim), jnp.float32)
    w1, b1, w2, b2 = init_params(kp, dim, hidden_dim)
    ref = jnp.maximum(x @ w1.T + b1, 0.0) @ w2.T + b2

    # f32 weights (debug / exact path)
    p32 = prepare_ffn_params(w1, b1, w2, b2, compute_dtype=jnp.float32)
    out = jax.block_until_ready(feed_forward(x, *p32))
    assert out.shape == (batch, seq, dim) and out.dtype == x.dtype
    assert jnp.allclose(out, ref, atol=1e-5, rtol=1e-5)

    # bf16 weights (default fast path), f32 accumulation — loose check.
    pbf = prepare_ffn_params(w1, b1, w2, b2)
    out_bf = jax.block_until_ready(feed_forward(x, *pbf))
    assert out_bf.shape == (batch, seq, dim) and out_bf.dtype == x.dtype
    assert jnp.allclose(out_bf, ref, atol=5e-2, rtol=5e-2)

    # ---- medium shapes with a tiny tile-selection budget: forces the
    #      hidden-chunk streaming path (both streaming kernel variants) ----
    dim2, hidden2 = 256, 1024
    batch2, seq2 = 4, 64
    x2 = jax.random.normal(kx2, (batch2, seq2, dim2), jnp.float32)
    w1b, b1b, w2b, b2b = init_params(kp2, dim2, hidden2)
    ref2 = jnp.maximum(x2 @ w1b.T + b1b, 0.0) @ w2b.T + b2b

    # f32 output -> accumulates directly into the resident output block.
    q32 = prepare_ffn_params(w1b, b1b, w2b, b2b, compute_dtype=jnp.float32)
    out2 = jax.block_until_ready(
        feed_forward(x2, *q32, vmem_budget_bytes=2 * _MIB))
    assert out2.shape == (batch2, seq2, dim2)
    assert jnp.allclose(out2, ref2, atol=2e-3, rtol=2e-3)

    # bf16 output -> streams with a separate f32 VMEM accumulator.
    qbf = prepare_ffn_params(w1b, b1b, w2b, b2b)
    out2_bf = jax.block_until_ready(
        feed_forward(x2.astype(jnp.bfloat16), *qbf, vmem_budget_bytes=2 * _MIB))
    assert out2_bf.shape == (batch2, seq2, dim2) and out2_bf.dtype == jnp.bfloat16
    assert jnp.allclose(out2_bf.astype(jnp.float32), ref2, atol=1e-1, rtol=1e-1)

    print("KERNEL_OK")
</pallas_src>

<mosaic_0001>
module attributes {stable_mosaic.version = 11 : i64} {
  func.func @_ffn_kernel_resident(%arg0: i32, %arg1: memref<16x128xf32, #tpu.memory_space<vmem>>, %arg2: memref<128x128xf32, #tpu.memory_space<vmem>>, %arg3: memref<1x128xf32, #tpu.memory_space<vmem>>, %arg4: memref<128x128xf32, #tpu.memory_space<vmem>>, %arg5: memref<1x128xf32, #tpu.memory_space<vmem>>, %arg6: memref<16x128xf32, #tpu.memory_space<vmem>>) attributes {dimension_semantics = [#tpu.dimension_semantics<parallel>], iteration_bounds = array<i64: 1>, scalar_prefetch = 0 : i64, scratch_operands = 0 : i64, tpu.core_type = #tpu.core_type<tc>, window_params = [{transform_indices = @transform_0, window_bounds = array<i64: 16, 128>}, {pipeline_mode = #tpu.pipeline_mode<synchronous>, transform_indices = @transform_1, window_bounds = array<i64: 128, 128>}, {pipeline_mode = #tpu.pipeline_mode<synchronous>, transform_indices = @transform_2, window_bounds = array<i64: 1, 128>}, {pipeline_mode = #tpu.pipeline_mode<synchronous>, transform_indices = @transform_3, window_bounds = array<i64: 128, 128>}, {pipeline_mode = #tpu.pipeline_mode<synchronous>, transform_indices = @transform_4, window_bounds = array<i64: 1, 128>}, {transform_indices = @transform_5, window_bounds = array<i64: 16, 128>}]} {
    %c0 = arith.constant 0 : index
    %c0_0 = arith.constant 0 : index
    %0 = vector.load %arg1[%c0, %c0_0] : memref<16x128xf32, #tpu.memory_space<vmem>>, vector<16x128xf32>
    %c0_1 = arith.constant 0 : index
    %c0_2 = arith.constant 0 : index
    %1 = vector.load %arg2[%c0_1, %c0_2] : memref<128x128xf32, #tpu.memory_space<vmem>>, vector<128x128xf32>
    %cst = arith.constant dense<0.000000e+00> : vector<16x128xf32>
    %2 = tpu.matmul %0, %1, %cst {dimension_numbers = #tpu.dot_dimension_numbers<[1], [0], [0], [1], [0, 0, 1, 1], [], []>} : vector<16x128xf32>, vector<128x128xf32>, vector<16x128xf32> -> vector<16x128xf32>
    %c0_3 = arith.constant 0 : index
    %c0_4 = arith.constant 0 : index
    %3 = vector.load %arg3[%c0_3, %c0_4] : memref<1x128xf32, #tpu.memory_space<vmem>>, vector<1x128xf32>
    %4 = vector.broadcast %3 : vector<1x128xf32> to vector<16x128xf32>
    %5 = arith.addf %2, %4 : vector<16x128xf32>
    %cst_5 = arith.constant 0.000000e+00 : f32
    %6 = vector.broadcast %cst_5 : f32 to vector<16x128xf32>
    %7 = arith.maximumf %5, %6 : vector<16x128xf32>
    %c0_6 = arith.constant 0 : index
    %c0_7 = arith.constant 0 : index
    %8 = vector.load %arg4[%c0_6, %c0_7] : memref<128x128xf32, #tpu.memory_space<vmem>>, vector<128x128xf32>
    %cst_8 = arith.constant dense<0.000000e+00> : vector<16x128xf32>
    %9 = tpu.matmul %7, %8, %cst_8 {dimension_numbers = #tpu.dot_dimension_numbers<[1], [0], [0], [1], [0, 0, 1, 1], [], []>} : vector<16x128xf32>, vector<128x128xf32>, vector<16x128xf32> -> vector<16x128xf32>
    %c0_9 = arith.constant 0 : index
    %c0_10 = arith.constant 0 : index
    %10 = vector.load %arg5[%c0_9, %c0_10] : memref<1x128xf32, #tpu.memory_space<vmem>>, vector<1x128xf32>
    %11 = vector.broadcast %10 : vector<1x128xf32> to vector<16x128xf32>
    %12 = arith.addf %9, %11 : vector<16x128xf32>
    %c0_11 = arith.constant 0 : index
    %c0_12 = arith.constant 0 : index
    %13 = vector.load %arg6[%c0_11, %c0_12] : memref<16x128xf32, #tpu.memory_space<vmem>>, vector<16x128xf32>
    tpu.vector_store %arg6[%c0_11, %c0_12], %12 {strides = array<i32>} : memref<16x128xf32, #tpu.memory_space<vmem>>, vector<16x128xf32>,
    return
  }
  func.func @transform_0(%arg0: i32) -> (i32, i32) {
    %c0_i32 = arith.constant 0 : i32
    %c0_i32_0 = arith.constant 0 : i32
    return %arg0, %c0_i32 : i32, i32
  }
  func.func @transform_1(%arg0: i32) -> (i32, i32) {
    %c0_i32 = arith.constant 0 : i32
    %c0_i32_0 = arith.constant 0 : i32
    %c0_i32_1 = arith.constant 0 : i32
    return %c0_i32, %c0_i32_0 : i32, i32
  }
  func.func @transform_2(%arg0: i32) -> (i32, i32) {
    %c0_i32 = arith.constant 0 : i32
    %c0_i32_0 = arith.constant 0 : i32
    %c0_i32_1 = arith.constant 0 : i32
    return %c0_i32, %c0_i32_0 : i32, i32
  }
  func.func @transform_3(%arg0: i32) -> (i32, i32) {
    %c0_i32 = arith.constant 0 : i32
    %c0_i32_0 = arith.constant 0 : i32
    %c0_i32_1 = arith.constant 0 : i32
    return %c0_i32, %c0_i32_0 : i32, i32
  }
  func.func @transform_4(%arg0: i32) -> (i32, i32) {
    %c0_i32 = arith.constant 0 : i32
    %c0_i32_0 = arith.constant 0 : i32
    %c0_i32_1 = arith.constant 0 : i32
    return %c0_i32, %c0_i32_0 : i32, i32
  }
  func.func @transform_5(%arg0: i32) -> (i32, i32) {
    %c0_i32 = arith.constant 0 : i32
    %c0_i32_0 = arith.constant 0 : i32
    return %arg0, %c0_i32 : i32, i32
  }
}

</mosaic_0001>

<bundles_post_ra>
// kernel: feed_forward.1
= control target key start
LH: loop header
LB: loop body
LE: loop exit
PB: predicated region body
PF: predicated region fallthrough
CT: control target
= control target key end

     0   :  { %10 = vsyncpa [#allocation3], 0  ;;  %s556_s0 = inlined_call_operand.vmem [shape: f32[16,128], index: 0, kind: input, shape index: {}]   ;;  %s557_s1 = inlined_call_operand.hbm [shape: f32[128,128], index: 1, kind: input, shape index: {}]   ;;  %s558_s2 = inlined_call_operand.vmem [shape: f32[1,128], index: 2, kind: input, shape index: {}]   ;;  %s559_s3 = inlined_call_operand.hbm [shape: f32[128,128], index: 3, kind: input, shape index: {}]   ;;  %s560_s4 = inlined_call_operand.vmem [shape: f32[1,128], index: 4, kind: input, shape index: {}]   ;;  %s561_s5 = inlined_call_operand.vmem [shape: f32[16,128], index: 5, kind: output, shape index: {}]  }
   0x1   :  { %11 = vsyncpa [#allocation5], 0  ;;  %s480_s18 = smov [#allocation2]   ;;  %s432_s22 = scalar_lea.hbm %s557_s1, 2048 }
   0x2   :  { %s19_s19 = sshll.u32 %s480_s18, 4  ;;  %p433_p0 = scmp.ne.s32.totalorder %s557_s1, %s432_s22  ;;  %s20_s19 = int_to_ptr.vmem [resolvable:$true] %s19_s19 }
   0x3   :  { %p436_p1 = scmp.lt.u32.totalorder %s432_s22, %s557_s1 }
   0x5   :  { %p438_p2 = pnand %p436_p1, %p433_p0 }
   0x7   :  { %441 = shalt.err (!%p438_p2)
}
   0x8   :  { %s442_s27 = scalar_lea.vmem %s20_s19, 2048  ;;  %p447_p4 = scmp.lt.s32.totalorder %s20_s19, %s20_s19 }
   0x9   :  { %p443_p3 = scmp.ne.s32.totalorder %s20_s19, %s442_s27  ;;  %p448_p5 = scmp.lt.s32.totalorder %s442_s27, %s442_s27 }
   0xb   :  { %p449_p6 = por %p448_p5, %p447_p4 }
   0xd   :  { %p450_p7 = pnand %p449_p6, %p443_p3 }
   0xf   :  { %453 = shalt.err (!%p450_p7)
}
  0x10   :  { %s481_s28 = smov 128   ;;  %s482_s29 = smov 8  }
  0x11   :  { %25 = dma.hbm_to_vmem [thread:$0]  %s557_s1, 2048, %s20_s19, [#allocation3], %s481_s28, %s481_s28, %s482_s29  }
  0x12   :  { %s483_s7 = smov [#allocation4]   ;;  %s454_s11 = scalar_lea.hbm %s559_s3, 2048 }
  0x13   :  { %s33_s8 = sshll.u32 %s483_s7, 4  ;;  %p455_p8 = scmp.ne.s32.totalorder %s559_s3, %s454_s11  ;;  %s34_s8 = int_to_ptr.vmem [resolvable:$true] %s33_s8 }
  0x14   :  { %p458_p9 = scmp.lt.u32.totalorder %s454_s11, %s559_s3 }
  0x16   :  { %p460_p10 = pnand %p458_p9, %p455_p8 }
  0x18   :  { %463 = shalt.err (!%p460_p10)
}
  0x19   :  { %s464_s16 = scalar_lea.vmem %s34_s8, 2048  ;;  %p469_p12 = scmp.lt.s32.totalorder %s34_s8, %s34_s8 }
  0x1a   :  { %p465_p11 = scmp.ne.s32.totalorder %s34_s8, %s464_s16  ;;  %p470_p13 = scmp.lt.s32.totalorder %s464_s16, %s464_s16 }
  0x1c   :  { %p471_p0 = por %p470_p13, %p469_p12 }
  0x1e   :  { %p472_p1 = pnand %p471_p0, %p465_p11 }
  0x20   :  { %475 = shalt.err (!%p472_p1)
}
  0x21   :  { %39 = dma.hbm_to_vmem [thread:$0]  %s559_s3, 2048, %s34_s8, [#allocation5], %s481_s28, %s481_s28, %s482_s29  }
  0x22   :  { %476 = dma.done.wait [#allocation3], 2048  }
  0x23   :  { %477 = vsyncadd [#allocation3], 4294965248 }
  0x24   :  { %478 = dma.done.wait [#allocation5], 2048  }
  0x25   :  { %479 = vsyncadd [#allocation5], 4294965248  ;;  %v50_v0 = vld [vmem:[#allocation2] sm:$0xff]  ;;  %v51_v1 = vld [vmem:[#allocation2 + $0x8] sm:$0xff] }
  0x26   :  { %v52_v2 = vld [vmem:[#allocation2 + $0x10] sm:$0xff]  ;;  %v364_v3 = vpack.c.bf16 %v51_v1, %v50_v0  ;;  %v53_v4 = vld [vmem:[#allocation2 + $0x18] sm:$0xff]  ;;  %v54_v6 = vld [vmem:[#allocation2 + $0x20] sm:$0xff] }
  0x27   :  { %v368_v5 = vpack.c.bf16 %v53_v4, %v52_v2  ;;  %v55_v7 = vld [vmem:[#allocation2 + $0x28] sm:$0xff]  ;;  %v56_v9 = vld [vmem:[#allocation2 + $0x30] sm:$0xff]  ;;  %v57_v10 = vld [vmem:[#allocation2 + $0x38] sm:$0xff] }
  0x28   :  { %365 = vmatprep.subr.bf16.mxu0 %v364_v3  ;;  %v372_v8 = vpack.c.bf16 %v55_v7, %v54_v6  ;;  %v48_v11 = vld [vmem:[%s556_s0] sm:$0xff]  ;;  %v151_v13 = vld [vmem:[#allocation4 + $0x8] sm:$0xff]  ;;  %v152_v14 = vld [vmem:[#allocation4 + $0x10] sm:$0xff]  ;;  %v376_v20 = vpack.c.bf16 %v57_v10, %v56_v9 }
  0x29   :  { %367 = vmatpush3.bf16.msra.mxu0 %v364_v3  ;;  %326 = vmatprep.mubr.f32.mxu0 %v48_v11  ;;  %v150_v12 = vld [vmem:[#allocation4] sm:$0xff]  ;;  %v153_v16 = vld [vmem:[#allocation4 + $0x18] sm:$0xff]  ;;  %v155_v19 = vld [vmem:[#allocation4 + $0x28] sm:$0xff] }
  0x2a   :  { %369 = vmatprep.subr.bf16.mxu0 %v368_v5  ;;  %v396_v15 = vpack.c.bf16 %v151_v13, %v150_v12  ;;  %v400_v17 = vpack.c.bf16 %v153_v16, %v152_v14  ;;  %v154_v18 = vld [vmem:[#allocation4 + $0x20] sm:$0xff]  ;;  %v59_v22 = vld [vmem:[#allocation2 + $0x48] sm:$0xff]  ;;  %v156_v24 = vld [vmem:[#allocation4 + $0x30] sm:$0xff] }
  0x2b   :  { %v58_v21 = vld [vmem:[#allocation2 + $0x40] sm:$0xff]  ;;  %v404_v23 = vpack.c.bf16 %v155_v19, %v154_v18  ;;  %v157_v25 = vld [vmem:[#allocation4 + $0x38] sm:$0xff]  ;;  %v60_v27 = vld [vmem:[#allocation2 + $0x50] sm:$0xff] }
  0x2c   :  { %397 = vmatprep.subr.bf16.mxu1 %v396_v15  ;;  %v380_v26 = vpack.c.bf16 %v59_v22, %v58_v21  ;;  %v61_v28 = vld [vmem:[#allocation2 + $0x58] sm:$0xff]  ;;  %v408_v29 = vpack.c.bf16 %v157_v25, %v156_v24  ;;  %v158_v30 = vld [vmem:[#allocation4 + $0x40] sm:$0xff]  ;;  %v159_v31 = vld [vmem:[#allocation4 + $0x48] sm:$0xff] }
  0x2d   :  { %371 = vmatpush3.bf16.msra.mxu0 %v368_v5  ;;  %399 = vmatpush3.bf16.msra.mxu1 %v396_v15  ;;  %v384_v32 = vpack.c.bf16 %v61_v28, %v60_v27  ;;  %v62_v33 = vld [vmem:[#allocation2 + $0x60] sm:$0xff]  ;;  %v63_v34 = vld [vmem:[#allocation2 + $0x68] sm:$0xff]  ;;  %v412_v35 = vpack.c.bf16 %v159_v31, %v158_v30  ;;  %v160_v36 = vld [vmem:[#allocation4 + $0x50] sm:$0xff] }
  0x2e   :  { %373 = vmatprep.subr.bf16.mxu0 %v372_v8  ;;  %401 = vmatprep.subr.bf16.mxu1 %v400_v17  ;;  %v161_v37 = vld [vmem:[#allocation4 + $0x58] sm:$0xff]  ;;  %v388_v38 = vpack.c.bf16 %v63_v34, %v62_v33  ;;  %v64_v39 = vld [vmem:[#allocation2 + $0x70] sm:$0xff]  ;;  %v162_v42 = vld [vmem:[#allocation4 + $0x60] sm:$0xff] }
  0x2f   :  { %v65_v40 = vld [vmem:[#allocation2 + $0x78] sm:$0xff]  ;;  %v416_v41 = vpack.c.bf16 %v161_v37, %v160_v36  ;;  %v163_v43 = vld [vmem:[#allocation4 + $0x68] sm:$0xff]  ;;  %v164_v47 = vld [vmem:[#allocation4 + $0x70] sm:$0xff] }
  0x30   :  { %v392_v44 = vpack.c.bf16 %v65_v40, %v64_v39  ;;  %v420_v45 = vpack.c.bf16 %v163_v43, %v162_v42  ;;  %v49_v46 = vld [vmem:[%s556_s0 + $0x8] sm:$0xff]  ;;  %v165_v48 = vld [vmem:[#allocation4 + $0x78] sm:$0xff]  ;;  %v256_v50 = vld [vmem:[%s558_s2] ss:$0 sm:$0xff] }
  0x31   :  { %375 = vmatpush3.bf16.msra.mxu0 %v372_v8  ;;  %403 = vmatpush3.bf16.msra.mxu1 %v400_v17  ;;  %v424_v49 = vpack.c.bf16 %v165_v48, %v164_v47  ;;  %v257_v57 = vld [vmem:[%s560_s4] ss:$0 sm:$0xff] }
  0x32   :  { %377 = vmatprep.subr.bf16.mxu0 %v376_v20  ;;  %405 = vmatprep.subr.bf16.mxu1 %v404_v23 }
  0x35   :  { %379 = vmatpush3.bf16.msra.mxu0 %v376_v20  ;;  %407 = vmatpush3.bf16.msra.mxu1 %v404_v23 }
  0x36   :  { %381 = vmatprep.subr.bf16.mxu0 %v380_v26  ;;  %409 = vmatprep.subr.bf16.mxu1 %v408_v29 }
  0x39   :  { %383 = vmatpush3.bf16.msra.mxu0 %v380_v26  ;;  %411 = vmatpush3.bf16.msra.mxu1 %v408_v29 }
  0x3a   :  { %385 = vmatprep.subr.bf16.mxu0 %v384_v32  ;;  %413 = vmatprep.subr.bf16.mxu1 %v412_v35 }
  0x3d   :  { %387 = vmatpush3.bf16.msra.mxu0 %v384_v32  ;;  %415 = vmatpush3.bf16.msra.mxu1 %v412_v35 }
  0x3e   :  { %389 = vmatprep.subr.bf16.mxu0 %v388_v38  ;;  %417 = vmatprep.subr.bf16.mxu1 %v416_v41 }
  0x41   :  { %391 = vmatpush3.bf16.msra.mxu0 %v388_v38  ;;  %419 = vmatpush3.bf16.msra.mxu1 %v416_v41 }
  0x42   :  { %393 = vmatprep.subr.bf16.mxu0 %v392_v44  ;;  %421 = vmatprep.subr.bf16.mxu1 %v420_v45 }
  0x45   :  { %395 = vmatpush3.bf16.msra.mxu0 %v392_v44  ;;  %423 = vmatpush3.bf16.msra.mxu1 %v420_v45 }
  0x46   :  { %425 = vmatprep.subr.bf16.mxu1 %v424_v49 }
  0x48   :  { %327 = vmatmul.mubr.f32.vlgmr.msra.gmra.mrb[0].mxu0 %v49_v46 }
  0x49   :  { %427 = vmatpush3.bf16.msra.mxu1 %v424_v49 }
 0x11b   :  { %v328_v51 = vpop.f32.mrb[0].mxu0 }
 0x11c   :  { %v145_v52 = vadd.f32 %v328_v51, %v256_v50  ;;  %v139_v53 = vpop.f32.mrb[1].mxu0 }
 0x11d   :  { %v140_v54 = vadd.f32 %v256_v50, %v139_v53 }
 0x11e   :  { %v149_v56 = vmax.f32 %v145_v52, 0.0 }
 0x11f   :  { %v148_v55 = vmax.f32 %v140_v54, 0.0 }
 0x121   :  { %361 = vmatprep.mubr.f32.mxu1 %v148_v55 }
 0x122   :  { %362 = vmatmul.mubr.f32.vlgmr.msra.gmra.mrb[0].mxu1 %v149_v56 }
 0x1f5   :  { %v363_v58 = vpop.f32.mrb[0].mxu1 }
 0x1f6   :  { %v245_v59 = vadd.f32 %v363_v58, %v257_v57  ;;  %v239_v60 = vpop.f32.mrb[1].mxu1 }
 0x1f7   :  { %v240_v61 = vadd.f32 %v257_v57, %v239_v60 }
 0x1f8   :  { %249 = vst [vmem:[%s561_s5 + $0x8] sm:$0xff] %v245_v59 }
 0x1f9   :  { %248 = vst [vmem:[%s561_s5] sm:$0xff] %v240_v61 }
 0x1fa   :  { %254 = vsyncpa [#allocation3], 1 }
 0x1fb   :  { %255 = vsyncpa [#allocation5], 1 }

</bundles_post_ra>
